<compile_context>
chip_gen: v6e
topology: v6e:2x2x1
jax: 0.10.0
libtpu: 0.0.40
codegen_flags: <defaults>
</compile_context>

<pallas_src>
import jax
import jax.numpy as jnp
import numpy as np
from jax.experimental import pallas as pl
from jax.experimental.pallas import tpu as pltpu

MAX_PITCH_YAW_ANGLE = 20.0  # degrees (constant referenced by the module)

_LANE = 128          # lane width
_MAX_TILE_COLS = 2048  # max points per block (3 * 2048 * 4B = 24 KiB per tile)


# --------------------------------------------------------------------------
# Pallas kernel: lane-dense per-point rotation on the VPU
# --------------------------------------------------------------------------
def _rotate_kernel(r_ref, pts_ref, out_ref):
    """out = R @ pts for one (3, TL) column tile.

    r_ref  : SMEM (9,) f32 — row-major 3x3 rotation matrix (scalar prefetch)
    pts_ref: VMEM (3, TL) f32 — rows are the x / y / z coords of TL points
    out_ref: VMEM (3, TL) f32 — rotated coordinates
    """
    p = pts_ref[...]                     # (3, TL), single lane-dense load
    px = p[0:1, :]
    py = p[1:2, :]
    pz = p[2:3, :]
    # VPU FMA chain with SMEM scalar broadcasts (no MXU, lane-dense stores).
    out_ref[0:1, :] = r_ref[0] * px + r_ref[1] * py + r_ref[2] * pz
    out_ref[1:2, :] = r_ref[3] * px + r_ref[4] * py + r_ref[5] * pz
    out_ref[2:3, :] = r_ref[6] * px + r_ref[7] * py + r_ref[8] * pz


def _rotate_points_pallas(r_flat, pts, tl):
    """pts: (3, m_pad) f32 with m_pad % tl == 0; r_flat: (9,) f32; tl static."""
    m_pad = pts.shape[1]
    grid = (m_pad // tl,)
    return pl.pallas_call(
        _rotate_kernel,
        out_shape=jax.ShapeDtypeStruct((3, m_pad), jnp.float32),
        grid_spec=pltpu.PrefetchScalarGridSpec(
            num_scalar_prefetch=1,          # rotation matrix -> SMEM
            grid=grid,
            in_specs=[pl.BlockSpec((3, tl), lambda i, r_smem: (0, i))],
            out_specs=pl.BlockSpec((3, tl), lambda i, r_smem: (0, i)),
        ),
        compiler_params=pltpu.CompilerParams(
            dimension_semantics=("parallel",),
        ),
    )(r_flat, pts)


# --------------------------------------------------------------------------
# Rotation-matrix construction (traced, on device, f32)
# --------------------------------------------------------------------------
def _rot3(c, s, axis):
    z = jnp.zeros_like(c)
    o = jnp.ones_like(c)
    if axis == 0:    # about x
        rows = ((o, z, z), (z, c, -s), (z, s, c))
    elif axis == 1:  # about y
        rows = ((c, z, s), (z, o, z), (-s, z, c))
    else:            # about z
        rows = ((c, -s, z), (s, c, z), (z, z, o))
    return jnp.stack([jnp.stack(r) for r in rows])


def _rotation_matrix(alpha_deg, beta_deg, gamma_deg):
    """R = Rz(roll) @ Ry(yaw) @ Rx(pitch), angles in degrees (traced scalars)."""
    a = jnp.deg2rad(alpha_deg)   # yaw   about y
    b = jnp.deg2rad(beta_deg)    # pitch about x
    g = jnp.deg2rad(gamma_deg)   # roll  about z
    ry = _rot3(jnp.cos(a), jnp.sin(a), axis=1)
    rx = _rot3(jnp.cos(b), jnp.sin(b), axis=0)
    rz = _rot3(jnp.cos(g), jnp.sin(g), axis=2)
    return (rz @ ry @ rx).astype(jnp.float32)


# --------------------------------------------------------------------------
# Fused forward path (all inside one jit)
# --------------------------------------------------------------------------
def _tile_cols(m):
    m128 = -(-m // _LANE) * _LANE
    return min(m128, _MAX_TILE_COLS)


def _apply_rotation(x, alpha, beta, gamma):
    """x: [T, N, 3]; angles in degrees (traced f32 scalars) -> rotated [T, N, 3]."""
    T, N, C = x.shape
    assert C == 3, "last axis must be the 3 coordinates"
    r_flat = _rotation_matrix(alpha, beta, gamma).reshape(9)

    m = T * N
    tl = _tile_cols(m)                      # static python int
    m_pad = -(-m // tl) * tl

    # lane-dense layout: [3, M] (v5e-safe: all arithmetic stays in f32)
    pts = x.reshape(m, 3).astype(jnp.float32).T        # (3, m)
    if m_pad != m:                                      # pad only on lane axis
        pts = jnp.pad(pts, ((0, 0), (0, m_pad - m)))
    out = _rotate_points_pallas(r_flat, pts, tl)
    if m_pad != m:
        out = out[:, :m]
    return out.T.reshape(T, N, 3).astype(x.dtype)


@jax.jit
def affine_transform_sequence(x, alpha, beta, gamma):
    """Rotate every 3-D point of the sequence x: [T, N, 3] -> [T, N, 3]."""
    return _apply_rotation(
        x,
        jnp.asarray(alpha, jnp.float32),
        jnp.asarray(beta, jnp.float32),
        jnp.asarray(gamma, jnp.float32),
    )


@jax.jit
def _affine_forward_training(x, key, max_yaw, max_pitch, max_roll):
    # on-device equivalent of three torch.rand(1).item() * max_* draws
    u = jax.random.uniform(key, (3,), dtype=jnp.float32)
    alpha = u[0] * max_yaw
    beta = u[1] * max_pitch
    gamma = u[2] * max_roll
    return _apply_rotation(x, alpha, beta, gamma)[None]   # .unsqueeze(0)


class AffineTransform:
    """JAX/Pallas port of the PyTorch AffineTransform module."""

    def __init__(self, max_yaw: float = 0.0,
                 max_pitch: float = MAX_PITCH_YAW_ANGLE,
                 max_roll: float = 0.0):
        self.max_yaw = float(max_yaw)
        self.max_pitch = float(max_pitch)
        self.max_roll = float(max_roll)
        self.training = True

    def __call__(self, x, key=None):
        if self.training:
            if key is None:
                raise ValueError("training-mode AffineTransform needs a PRNG key")
            return _affine_forward_training(
                x, key,
                jnp.asarray(self.max_yaw, jnp.float32),
                jnp.asarray(self.max_pitch, jnp.float32),
                jnp.asarray(self.max_roll, jnp.float32),
            )
        return x


if __name__ == "__main__":
    key = jax.random.PRNGKey(0)
    k_x, k_ang = jax.random.split(key)

    T, N = 8, 16  # seq = 8 frames, 16 keypoints per frame, 3 coords each
    x = jax.random.normal(k_x, (T, N, 3), dtype=jnp.float32)

    module = AffineTransform(max_yaw=0.0, max_pitch=MAX_PITCH_YAW_ANGLE, max_roll=0.0)
    module.training = True

    out = jax.block_until_ready(module(x, k_ang))
    assert out.shape == (1, T, N, 3), out.shape

    # pure-NumPy reference of the kernel math (same angles as the device path)
    u = np.asarray(jax.random.uniform(k_ang, (3,), dtype=jnp.float32))
    alpha = float(u[0]) * module.max_yaw
    beta = float(u[1]) * module.max_pitch
    gamma = float(u[2]) * module.max_roll
    a, b, g = np.deg2rad(alpha), np.deg2rad(beta), np.deg2rad(gamma)
    rx = np.array([[1, 0, 0],
                   [0, np.cos(b), -np.sin(b)],
                   [0, np.sin(b), np.cos(b)]], dtype=np.float64)
    ry = np.array([[np.cos(a), 0, np.sin(a)],
                   [0, 1, 0],
                   [-np.sin(a), 0, np.cos(a)]], dtype=np.float64)
    rz = np.array([[np.cos(g), -np.sin(g), 0],
                   [np.sin(g), np.cos(g), 0],
                   [0, 0, 1]], dtype=np.float64)
    r = rz @ ry @ rx
    ref = (np.asarray(x).reshape(T * N, 3) @ r.T).reshape(1, T, N, 3)
    np.testing.assert_allclose(np.asarray(out), ref.astype(np.float32),
                               rtol=1e-5, atol=1e-5)

    # eval mode: identity
    module.training = False
    out_eval = jax.block_until_ready(module(x, k_ang))
    np.testing.assert_allclose(np.asarray(out_eval), np.asarray(x), rtol=0, atol=0)

    print("KERNEL_OK")
</pallas_src>

<mosaic_0001>
module attributes {stable_mosaic.version = 11 : i64} {
  func.func @_rotate_kernel(%arg0: i32, %arg1: memref<9xf32, #tpu.memory_space<smem>>, %arg2: memref<3x128xf32, #tpu.memory_space<vmem>>, %arg3: memref<3x128xf32, #tpu.memory_space<vmem>>) attributes {dimension_semantics = [#tpu.dimension_semantics<parallel>], iteration_bounds = array<i64: 1>, scalar_prefetch = 1 : i64, scratch_operands = 0 : i64, tpu.core_type = #tpu.core_type<tc>, window_params = [{transform_indices = @transform_0, window_bounds = array<i64: 3, 128>}, {transform_indices = @transform_1, window_bounds = array<i64: 3, 128>}]} {
    %c0 = arith.constant 0 : index
    %c0_0 = arith.constant 0 : index
    %0 = vector.load %arg2[%c0, %c0_0] : memref<3x128xf32, #tpu.memory_space<vmem>>, vector<3x128xf32>
    %1 = vector.extract_strided_slice %0 {offsets = [0, 0], sizes = [1, 128], strides = [1, 1]} : vector<3x128xf32> to vector<1x128xf32>
    %2 = vector.extract_strided_slice %0 {offsets = [1, 0], sizes = [1, 128], strides = [1, 1]} : vector<3x128xf32> to vector<1x128xf32>
    %3 = vector.extract_strided_slice %0 {offsets = [2, 0], sizes = [1, 128], strides = [1, 1]} : vector<3x128xf32> to vector<1x128xf32>
    %c0_1 = arith.constant 0 : index
    %4 = memref.load %arg1[%c0_1] : memref<9xf32, #tpu.memory_space<smem>>
    %5 = vector.broadcast %4 : f32 to vector<1x128xf32>
    %6 = arith.mulf %5, %1 : vector<1x128xf32>
    %c1 = arith.constant 1 : index
    %7 = memref.load %arg1[%c1] : memref<9xf32, #tpu.memory_space<smem>>
    %8 = vector.broadcast %7 : f32 to vector<1x128xf32>
    %9 = arith.mulf %8, %2 : vector<1x128xf32>
    %10 = arith.addf %6, %9 : vector<1x128xf32>
    %c2 = arith.constant 2 : index
    %11 = memref.load %arg1[%c2] : memref<9xf32, #tpu.memory_space<smem>>
    %12 = vector.broadcast %11 : f32 to vector<1x128xf32>
    %13 = arith.mulf %12, %3 : vector<1x128xf32>
    %14 = arith.addf %10, %13 : vector<1x128xf32>
    %c0_2 = arith.constant 0 : index
    %c0_3 = arith.constant 0 : index
    %15 = vector.load %arg3[%c0_2, %c0_3] : memref<3x128xf32, #tpu.memory_space<vmem>>, vector<1x128xf32>
    tpu.vector_store %arg3[%c0_2, %c0_3], %14 {strides = array<i32>} : memref<3x128xf32, #tpu.memory_space<vmem>>, vector<1x128xf32>,
    %c3 = arith.constant 3 : index
    %16 = memref.load %arg1[%c3] : memref<9xf32, #tpu.memory_space<smem>>
    %17 = vector.broadcast %16 : f32 to vector<1x128xf32>
    %18 = arith.mulf %17, %1 : vector<1x128xf32>
    %c4 = arith.constant 4 : index
    %19 = memref.load %arg1[%c4] : memref<9xf32, #tpu.memory_space<smem>>
    %20 = vector.broadcast %19 : f32 to vector<1x128xf32>
    %21 = arith.mulf %20, %2 : vector<1x128xf32>
    %22 = arith.addf %18, %21 : vector<1x128xf32>
    %c5 = arith.constant 5 : index
    %23 = memref.load %arg1[%c5] : memref<9xf32, #tpu.memory_space<smem>>
    %24 = vector.broadcast %23 : f32 to vector<1x128xf32>
    %25 = arith.mulf %24, %3 : vector<1x128xf32>
    %26 = arith.addf %22, %25 : vector<1x128xf32>
    %c1_4 = arith.constant 1 : index
    %c0_5 = arith.constant 0 : index
    %27 = vector.load %arg3[%c1_4, %c0_5] : memref<3x128xf32, #tpu.memory_space<vmem>>, vector<1x128xf32>
    tpu.vector_store %arg3[%c1_4, %c0_5], %26 {strides = array<i32>} : memref<3x128xf32, #tpu.memory_space<vmem>>, vector<1x128xf32>,
    %c6 = arith.constant 6 : index
    %28 = memref.load %arg1[%c6] : memref<9xf32, #tpu.memory_space<smem>>
    %29 = vector.broadcast %28 : f32 to vector<1x128xf32>
    %30 = arith.mulf %29, %1 : vector<1x128xf32>
    %c7 = arith.constant 7 : index
    %31 = memref.load %arg1[%c7] : memref<9xf32, #tpu.memory_space<smem>>
    %32 = vector.broadcast %31 : f32 to vector<1x128xf32>
    %33 = arith.mulf %32, %2 : vector<1x128xf32>
    %34 = arith.addf %30, %33 : vector<1x128xf32>
    %c8 = arith.constant 8 : index
    %35 = memref.load %arg1[%c8] : memref<9xf32, #tpu.memory_space<smem>>
    %36 = vector.broadcast %35 : f32 to vector<1x128xf32>
    %37 = arith.mulf %36, %3 : vector<1x128xf32>
    %38 = arith.addf %34, %37 : vector<1x128xf32>
    %c2_6 = arith.constant 2 : index
    %c0_7 = arith.constant 0 : index
    %39 = vector.load %arg3[%c2_6, %c0_7] : memref<3x128xf32, #tpu.memory_space<vmem>>, vector<1x128xf32>
    tpu.vector_store %arg3[%c2_6, %c0_7], %38 {strides = array<i32>} : memref<3x128xf32, #tpu.memory_space<vmem>>, vector<1x128xf32>,
    return
  }
  func.func @transform_0(%arg0: i32, %arg1: memref<9xf32, #tpu.memory_space<smem>>) -> (i32, i32) {
    %c0_i32 = arith.constant 0 : i32
    %c0_i32_0 = arith.constant 0 : i32
    return %c0_i32, %arg0 : i32, i32
  }
  func.func @transform_1(%arg0: i32, %arg1: memref<9xf32, #tpu.memory_space<smem>>) -> (i32, i32) {
    %c0_i32 = arith.constant 0 : i32
    %c0_i32_0 = arith.constant 0 : i32
    return %c0_i32, %arg0 : i32, i32
  }
}

</mosaic_0001>

<bundles_post_ra>
// kernel: _affine_forward_training.1
= control target key start
LH: loop header
LB: loop body
LE: loop exit
PB: predicated region body
PF: predicated region fallthrough
CT: control target
= control target key end

     0   :  { %s128_s0 = inlined_call_operand.vmem [shape: f32[9], index: 0, kind: input, shape index: {}]   ;;  %s129_s1 = inlined_call_operand.vmem [shape: f32[3,128], index: 1, kind: input, shape index: {}]   ;;  %s130_s2 = inlined_call_operand.vmem [shape: f32[3,128], index: 2, kind: output, shape index: {}]  }
   0x1   :  { %s7_s11 = sshll.u32 %s128_s0, 4  ;;  %s8_s11 = int_to_ptr.vmem [resolvable:$true] %s7_s11 }
   0x2   :  { %s83_s12 = scalar_lea.vmem %s8_s11, 16  ;;  %p88_p1 = scmp.lt.s32.totalorder %s8_s11, %s8_s11 }
   0x3   :  { %p84_p0 = scmp.ne.s32.totalorder %s8_s11, %s83_s12  ;;  %p89_p2 = scmp.lt.s32.totalorder %s83_s12, %s83_s12 }
   0x5   :  { %p90_p3 = por %p89_p2, %p88_p1 }
   0x7   :  { %p91_p4 = pnand %p90_p3, %p84_p0 }
   0x9   :  { %94 = shalt.err (!%p91_p4)  }
   0xa   :  { %s97_s13 = smov [#allocation3]  }
   0xb   :  { %10 = dma.vmem_to_smem %s8_s11, 16, %s97_s13, [#allocation2] }
   0xc   :  { %95 = dma.done.wait [#allocation2], 16 }
   0xd   :  { %96 = vsyncadd [#allocation2], 4294967280 }
   0xe   :  { %12 = sfence }
   0xf   :  { %s16_s14 = sld [smem:[#allocation3]]  ;;  %v15_v0 = vld [vmem:[%s129_s1] sm:$0x7] }
  0x10   :  { %s74_s15 = sld [smem:[#allocation3 + $0x1]] }
  0x11   :  { %s75_s16 = sld [smem:[#allocation3 + $0x2]] }
  0x12   :  { %s76_s17 = sld [smem:[#allocation3 + $0x3]] }
  0x13   :  { %s77_s18 = sld [smem:[#allocation3 + $0x4]] }
  0x14   :  { %s78_s20 = sld [smem:[#allocation3 + $0x5]] }
  0x15   :  { %v17_v1 = vstv %s16_s14  ;;  %s79_s21 = sld [smem:[#allocation3 + $0x6]] }
  0x16   :  { %v20_v2 = vstv %s74_s15  ;;  %s80_s22 = sld [smem:[#allocation3 + $0x7]]  ;;  %v18_v3 = vmul.f32 %v17_v1, %v15_v0 }
  0x17   :  { %v21_v4 = vmul.f32 %v20_v2, %v15_v0  ;;  %v27_v5 = vstv %s75_s16  ;;  %s81_s23 = sld [smem:[#allocation3 + $0x8]] }
  0x18   :  { %v28_v6 = vmul.f32 %v27_v5, %v15_v0  ;;  %v35_v7 = vstv %s76_s17 }
  0x19   :  { %v23_v8 = vrot.slane %v21_v4, 1  ;;  %v38_v9 = vstv %s77_s18  ;;  %v36_v11 = vmul.f32 %v35_v7, %v15_v0 }
  0x1a   :  { %v30_v10 = vrot.slane %v28_v6, 2  ;;  %v39_v12 = vmul.f32 %v38_v9, %v15_v0  ;;  %v45_v13 = vstv %s78_s20 }
  0x1b   :  { %v25_v14 = vadd.f32 %v23_v8, %v18_v3  ;;  %v46_v15 = vmul.f32 %v45_v13, %v15_v0  ;;  %v53_v16 = vstv %s79_s21 }
  0x1c   :  { %v41_v17 = vrot.slane %v39_v12, 1  ;;  %v54_v18 = vmul.f32 %v53_v16, %v15_v0  ;;  %v56_v19 = vstv %s80_s22 }
  0x1d   :  { %v32_v20 = vadd.f32 %v30_v10, %v25_v14  ;;  %v48_v21 = vrot.slane %v46_v15, 2  ;;  %v57_v22 = vmul.f32 %v56_v19, %v15_v0  ;;  %v63_v23 = vstv %s81_s23 }
  0x1e   :  { %v43_v24 = vadd.f32 %v41_v17, %v36_v11  ;;  %v64_v25 = vmul.f32 %v63_v23, %v15_v0 }
  0x1f   :  { %33 = vst [vmem:[%s130_s2] sm:$0x1] %v32_v20  ;;  %v59_v26 = vrot.slane %v57_v22, 1 }
  0x20   :  { %v50_v27 = vadd.f32 %v48_v21, %v43_v24  ;;  %v66_v28 = vrot.slane %v64_v25, 2 }
  0x21   :  { %v61_v29 = vadd.f32 %v59_v26, %v54_v18 }
  0x22   :  { %51 = vst [vmem:[%s130_s2 + $0x1] sm:$0x1] %v50_v27 }
  0x23   :  { %v68_v30 = vadd.f32 %v66_v28, %v61_v29 }
  0x25   :  { %69 = vst [vmem:[%s130_s2 + $0x2] sm:$0x1] %v68_v30 }

</bundles_post_ra>
